<compile_context>
chip_gen: v7x
topology: tpu7x:2x2x1
jax: 0.10.0
libtpu: 0.0.40
codegen_flags: <defaults>
</compile_context>

<pallas_src>
import jax
import jax.numpy as jnp
from jax import lax
from jax.experimental import pallas as pl
from jax.experimental.pallas import tpu as pltpu


def _discriminator_kernel(hpl_ref, hmi_ref, wc_ref, b_ref, out_ref):
    bias = b_ref[0]                              # scalar from SMEM
    wc = wc_ref[...]                             # (1, n_h), resident across steps
    dn = (((1,), (1,)), ((), ()))                # contract feature dim of both

    # sc_1 tile = wc @ h_pl_tile^T + b  -> (1, tm), f32 accumulation on the MXU
    sc1 = lax.dot_general(wc, hpl_ref[...], dn,
                          preferred_element_type=jnp.float32) + bias
    out_ref[0:1, :] = sc1

    # sc_2 tile = wc @ h_mi_tile^T + b  -> (1, tm)
    sc2 = lax.dot_general(wc, hmi_ref[...], dn,
                          preferred_element_type=jnp.float32) + bias
    out_ref[1:2, :] = sc2


def _round_up(x, m):
    return ((x + m - 1) // m) * m


def _choose_row_tile(N, n_h, itemsize):
    """Row tile (multiple of 128) for the streamed h_pl / h_mi tiles."""
    if N <= 256:
        # One full block; all block dims equal the array dims, so no (8,128)
        # constraint and no padding / ragged handling needed.
        return N
    # Target ~4 MiB of streamed bytes per input per grid step.
    target_bytes = 4 * 1024 * 1024
    tm = max(128, (target_bytes // (n_h * itemsize)) // 128 * 128)
    # Cap the double-buffered input footprint (2 inputs x 2 buffers) to ~32 MiB
    # so the whole pipeline stays comfortably inside v7x's 64 MiB VMEM.
    budget_bytes = 32 * 1024 * 1024
    tm_cap = max(128, (budget_bytes // (4 * n_h * itemsize)) // 128 * 128)
    tm = min(tm, tm_cap)
    # Guarantee >= 2 grid steps so the "parallel" axis can shard across both
    # TensorCores on v7x (no-op on single-TC v5e/v6e).
    tm_half = _round_up(pl.cdiv(N, 2), 128)
    return max(128, min(tm, tm_half))


def discriminator_forward(c, h_pl, h_mi, W, b, s_bias1=None, s_bias2=None):
    """c: (n_h,), h_pl/h_mi: (N, n_h), W: (n_h, n_h), b: (1,). Returns (2N,)."""
    N, n_h = h_pl.shape
    itemsize = jnp.dtype(h_pl.dtype).itemsize

    # wc = W @ c  (tiny: n_h x n_h flops) -- done once outside the kernel so
    # per-tile work is pure streaming of h rows.  Cast to the h dtype so the
    # MXU dot stays in the native (e.g. bf16) input precision.
    wc_row = (W.astype(jnp.float32) @ c.astype(jnp.float32)).astype(h_pl.dtype)
    wc_row = wc_row.reshape(1, n_h)

    tm = _choose_row_tile(N, n_h, itemsize)
    grid = (pl.cdiv(N, tm),)

    cost = pl.CostEstimate(
        flops=4 * N * n_h,
        transcendentals=0,
        bytes_accessed=2 * N * n_h * itemsize + 2 * N * 4 + n_h * itemsize + 4,
    )

    out = pl.pallas_call(
        _discriminator_kernel,
        out_shape=jax.ShapeDtypeStruct((2, N), jnp.float32),
        grid=grid,
        in_specs=[
            pl.BlockSpec((tm, n_h), lambda i: (i, 0)),     # h_pl tile (streamed)
            pl.BlockSpec((tm, n_h), lambda i: (i, 0)),     # h_mi tile (streamed)
            pl.BlockSpec((1, n_h), lambda i: (0, 0)),      # wc row (resident)
            pl.BlockSpec(memory_space=pltpu.SMEM),         # bias scalar
        ],
        out_specs=pl.BlockSpec((2, tm), lambda i: (0, i)), # lane-major scores
        compiler_params=pltpu.CompilerParams(
            dimension_semantics=("parallel",),
            vmem_limit_bytes=48 * 1024 * 1024,             # v7x-safe (<64 MiB)
        ),
        cost_estimate=cost,
    )(h_pl, h_mi, wc_row, b.astype(jnp.float32))

    sc_1 = out[0]
    sc_2 = out[1]
    if s_bias1 is not None:
        sc_1 = sc_1 + s_bias1
    if s_bias2 is not None:
        sc_2 = sc_2 + s_bias2
    # torch.cat((sc_1, sc_2), 0)
    return jnp.concatenate([sc_1, sc_2], axis=0)


def init_discriminator_params(key, n_h):
    """Matches nn.Bilinear(n_h, n_h, 1) + xavier_uniform_(weight), bias=0."""
    # torch xavier_uniform_ on weight of shape (1, n_h, n_h):
    #   fan_in = n_h * n_h, fan_out = 1 * n_h, bound = sqrt(6 / (fan_in + fan_out))
    bound = (6.0 / (n_h * n_h + n_h)) ** 0.5
    W = jax.random.uniform(key, (n_h, n_h), jnp.float32, -bound, bound)
    b = jnp.zeros((1,), jnp.float32)
    return W, b


def _reference(c, h_pl, h_mi, W, b):
    wc = W @ c
    return jnp.concatenate([h_pl @ wc + b[0], h_mi @ wc + b[0]], axis=0)


if __name__ == "__main__":
    key = jax.random.PRNGKey(0)

    # --- small case (single full block path) ---------------------------------
    n_h, N = 32, 8
    k_w, k_c, k_pl, k_mi, key = jax.random.split(key, 5)
    W, b = init_discriminator_params(k_w, n_h)
    c = jax.random.normal(k_c, (n_h,), jnp.float32)
    h_pl = jax.random.normal(k_pl, (N, n_h), jnp.float32)
    h_mi = jax.random.normal(k_mi, (N, n_h), jnp.float32)

    logits = jax.block_until_ready(discriminator_forward(c, h_pl, h_mi, W, b))
    assert logits.shape == (2 * N,)
    assert jnp.allclose(logits, _reference(c, h_pl, h_mi, W, b), atol=1e-5, rtol=1e-5)

    # --- ragged / multi-step grid path (tiled, partial last block) -----------
    n_h2, N2 = 64, 333
    k_w, k_c, k_pl, k_mi, key = jax.random.split(key, 5)
    W2, b2 = init_discriminator_params(k_w, n_h2)
    c2 = jax.random.normal(k_c, (n_h2,), jnp.float32)
    h_pl2 = jax.random.normal(k_pl, (N2, n_h2), jnp.float32)
    h_mi2 = jax.random.normal(k_mi, (N2, n_h2), jnp.float32)

    logits2 = jax.block_until_ready(discriminator_forward(c2, h_pl2, h_mi2, W2, b2))
    assert logits2.shape == (2 * N2,)
    assert jnp.allclose(logits2, _reference(c2, h_pl2, h_mi2, W2, b2),
                        atol=1e-4, rtol=1e-4)

    print("KERNEL_OK")
</pallas_src>

<mosaic_0001>
module attributes {stable_mosaic.version = 11 : i64} {
  func.func @_discriminator_kernel(%arg0: i32, %arg1: memref<8x32xf32, #tpu.memory_space<vmem>>, %arg2: memref<8x32xf32, #tpu.memory_space<vmem>>, %arg3: memref<1x32xf32, #tpu.memory_space<vmem>>, %arg4: memref<1xf32, #tpu.memory_space<smem>>, %arg5: memref<2x8xf32, #tpu.memory_space<vmem>>) attributes {dimension_semantics = [#tpu.dimension_semantics<parallel>], iteration_bounds = array<i64: 1>, scalar_prefetch = 0 : i64, scratch_operands = 0 : i64, tpu.core_type = #tpu.core_type<tc>, window_params = [{transform_indices = @transform_0, window_bounds = array<i64: 8, 32>}, {transform_indices = @transform_1, window_bounds = array<i64: 8, 32>}, {pipeline_mode = #tpu.pipeline_mode<synchronous>, transform_indices = @transform_2, window_bounds = array<i64: 1, 32>}, {transform_indices = @transform_3, window_bounds = array<i64: 1>}, {transform_indices = @transform_4, window_bounds = array<i64: 2, 8>}]} {
    %c0 = arith.constant 0 : index
    %0 = memref.load %arg4[%c0] : memref<1xf32, #tpu.memory_space<smem>>
    %c0_0 = arith.constant 0 : index
    %c0_1 = arith.constant 0 : index
    %1 = vector.load %arg3[%c0_0, %c0_1] : memref<1x32xf32, #tpu.memory_space<vmem>>, vector<1x32xf32>
    %c0_2 = arith.constant 0 : index
    %c0_3 = arith.constant 0 : index
    %2 = vector.load %arg1[%c0_2, %c0_3] : memref<8x32xf32, #tpu.memory_space<vmem>>, vector<8x32xf32>
    %cst = arith.constant dense<0.000000e+00> : vector<1x8xf32>
    %3 = tpu.matmul %1, %2, %cst {dimension_numbers = #tpu.dot_dimension_numbers<[1], [1], [0], [0], [0, 0, 1, 0], [], []>} : vector<1x32xf32>, vector<8x32xf32>, vector<1x8xf32> -> vector<1x8xf32>
    %4 = vector.broadcast %0 : f32 to vector<1x8xf32>
    %5 = arith.addf %3, %4 : vector<1x8xf32>
    %c0_4 = arith.constant 0 : index
    %c0_5 = arith.constant 0 : index
    %6 = vector.load %arg5[%c0_4, %c0_5] : memref<2x8xf32, #tpu.memory_space<vmem>>, vector<1x8xf32>
    tpu.vector_store %arg5[%c0_4, %c0_5], %5 {strides = array<i32>} : memref<2x8xf32, #tpu.memory_space<vmem>>, vector<1x8xf32>,
    %c0_6 = arith.constant 0 : index
    %c0_7 = arith.constant 0 : index
    %7 = vector.load %arg2[%c0_6, %c0_7] : memref<8x32xf32, #tpu.memory_space<vmem>>, vector<8x32xf32>
    %cst_8 = arith.constant dense<0.000000e+00> : vector<1x8xf32>
    %8 = tpu.matmul %1, %7, %cst_8 {dimension_numbers = #tpu.dot_dimension_numbers<[1], [1], [0], [0], [0, 0, 1, 0], [], []>} : vector<1x32xf32>, vector<8x32xf32>, vector<1x8xf32> -> vector<1x8xf32>
    %9 = vector.broadcast %0 : f32 to vector<1x8xf32>
    %10 = arith.addf %8, %9 : vector<1x8xf32>
    %c1 = arith.constant 1 : index
    %c0_9 = arith.constant 0 : index
    %11 = vector.load %arg5[%c1, %c0_9] : memref<2x8xf32, #tpu.memory_space<vmem>>, vector<1x8xf32>
    tpu.vector_store %arg5[%c1, %c0_9], %10 {strides = array<i32>} : memref<2x8xf32, #tpu.memory_space<vmem>>, vector<1x8xf32>,
    return
  }
  func.func @transform_0(%arg0: i32) -> (i32, i32) {
    %c0_i32 = arith.constant 0 : i32
    %c0_i32_0 = arith.constant 0 : i32
    return %arg0, %c0_i32 : i32, i32
  }
  func.func @transform_1(%arg0: i32) -> (i32, i32) {
    %c0_i32 = arith.constant 0 : i32
    %c0_i32_0 = arith.constant 0 : i32
    return %arg0, %c0_i32 : i32, i32
  }
  func.func @transform_2(%arg0: i32) -> (i32, i32) {
    %c0_i32 = arith.constant 0 : i32
    %c0_i32_0 = arith.constant 0 : i32
    %c0_i32_1 = arith.constant 0 : i32
    return %c0_i32, %c0_i32_0 : i32, i32
  }
  func.func @transform_3(%arg0: i32) -> i32 {
    %c0_i32 = arith.constant 0 : i32
    %c0_i32_0 = arith.constant 0 : i32
    return %c0_i32 : i32
  }
  func.func @transform_4(%arg0: i32) -> (i32, i32) {
    %c0_i32 = arith.constant 0 : i32
    %c0_i32_0 = arith.constant 0 : i32
    return %c0_i32, %arg0 : i32, i32
  }
}

</mosaic_0001>

<bundles_post_ra>
// kernel: tpu_custom_call.1
= control target key start
LH: loop header
LB: loop body
LE: loop exit
PB: predicated region body
PF: predicated region fallthrough
CT: control target
= control target key end

     0   :  { %10 = vsyncpa [#allocation4], 0  ;;  %s384_s0 = inlined_call_operand.hbm [shape: f32[8,32], index: 0, kind: input, shape index: {}]   ;;  %s385_s1 = inlined_call_operand.hbm [shape: f32[8,32], index: 1, kind: input, shape index: {}]   ;;  %s386_s2 = inlined_call_operand.vmem [shape: f32[1,32], index: 2, kind: input, shape index: {}]   ;;  %s387_s3 = inlined_call_operand.<no memory space> [shape: f32[1], index: 3, kind: input, shape index: {}]   ;;  %s388_s4 = inlined_call_operand.hbm [shape: f32[2,8], index: 4, kind: output, shape index: {}]  }
   0x1   :  { %11 = vsyncpa [#allocation7], 0 }
   0x2   :  { %12 = vsyncpa [#allocation5], 0  ;;  %s312_s15 = smov [#allocation3]   ;;  %s313_s17 = smov [#allocation6]  }
   0x3   :  { %s19_s16 = sshll.u32 %s312_s15, 4  ;;  %s29_s18 = sshll.u32 %s313_s17, 4  ;;  %s20_s16 = int_to_ptr.vmem [resolvable:$true] %s19_s16  ;;  %s30_s18 = int_to_ptr.vmem [resolvable:$true] %s29_s18 }
   0x4   :  { %s240_s21 = scalar_lea.hbm %s384_s0, 128 }
   0x5   :  { %p241_p0 = scmp.ne.s32.totalorder %s384_s0, %s240_s21  ;;  %p244_p1 = scmp.lt.u32.totalorder %s240_s21, %s384_s0 }
   0x7   :  { %p246_p2 = pnand %p244_p1, %p241_p0 }
   0x9   :  { %249 = shalt.err (!%p246_p2)
}
   0xa   :  { %s250_s26 = scalar_lea.vmem %s20_s16, 128  ;;  %p255_p4 = scmp.lt.s32.totalorder %s20_s16, %s20_s16 }
   0xb   :  { %p251_p3 = scmp.ne.s32.totalorder %s20_s16, %s250_s26  ;;  %p256_p5 = scmp.lt.s32.totalorder %s250_s26, %s250_s26 }
   0xd   :  { %p257_p6 = por %p256_p5, %p255_p4 }
   0xf   :  { %p258_p7 = pnand %p257_p6, %p251_p3 }
  0x11   :  { %261 = shalt.err (!%p258_p7)
}
  0x12   :  { %22 = dma.hbm_to_vmem [thread:$0]  %s384_s0, 128, %s20_s16, [#allocation4]  }
  0x13   :  { %s262_s5 = scalar_lea.hbm %s385_s1, 128 }
  0x14   :  { %p263_p8 = scmp.ne.s32.totalorder %s385_s1, %s262_s5  ;;  %p266_p9 = scmp.lt.u32.totalorder %s262_s5, %s385_s1 }
  0x16   :  { %p268_p10 = pnand %p266_p9, %p263_p8 }
  0x18   :  { %271 = shalt.err (!%p268_p10)
}
  0x19   :  { %s272_s10 = scalar_lea.vmem %s30_s18, 128  ;;  %p277_p12 = scmp.lt.s32.totalorder %s30_s18, %s30_s18 }
  0x1a   :  { %p273_p11 = scmp.ne.s32.totalorder %s30_s18, %s272_s10  ;;  %p278_p13 = scmp.lt.s32.totalorder %s272_s10, %s272_s10 }
  0x1c   :  { %p279_p0 = por %p278_p13, %p277_p12 }
  0x1e   :  { %p280_p1 = pnand %p279_p0, %p273_p11 }
  0x20   :  { %283 = shalt.err (!%p280_p1)
}
  0x21   :  { %32 = dma.hbm_to_vmem [thread:$0]  %s385_s1, 128, %s30_s18, [#allocation7]  }
  0x22   :  { %306 = dma.done.wait [#allocation4], 128  }
  0x23   :  { %307 = vsyncadd [#allocation4], 4294967168 }
  0x24   :  { %308 = dma.done.wait [#allocation7], 128  }
  0x25   :  { %309 = vsyncadd [#allocation7], 4294967168  ;;  %v314_v0 = vmov 0.0   ;;  %vm315_vm0 = vmmov 0   ;;  %vm47_vm1 = vcmask 261120   ;;  %v45_v1 = vld [vmem:[#allocation3] sm:$0xff]  ;;  %v46_v4 = vstv %s387_s3 }
  0x26   :  { %225 = vmatprep.subr.mxu0 %v314_v0  ;;  %230 = vmatprep.subr.mxu1 %v314_v0  ;;  %v126_v2 = vld [vmem:[#allocation6] sm:$0xff]  ;;  %v44_v3 = vld [vmem:[%s386_s2] sm:$0x1]  ;;  %s316_s15 = smov [#allocation8]   ;;  %vm124_vm2 = vcmask 57344  }
  0x27   :  { %227 = vmatprep.mubr.msk.f32.mxu0 %vm315_vm0, %v314_v0  ;;  %232 = vmatprep.mubr.msk.f32.mxu1 %vm315_vm0, %v314_v0  ;;  %s207_s16 = sshll.u32 %s316_s15, 4  ;;  %s208_s16 = int_to_ptr.vmem [resolvable:$true] %s207_s16 }
  0x28   :  { %226 = vmatpush3.xpose.msk.msra.mxu0 %vm47_vm1, %v45_v1  ;;  %231 = vmatpush3.xpose.msk.msra.mxu1 %vm47_vm1, %v126_v2  ;;  %s284_s17 = scalar_lea.vmem %s208_s16, 32  ;;  %p289_p3 = scmp.lt.s32.totalorder %s208_s16, %s208_s16 }
  0x29   :  { %p285_p2 = scmp.ne.s32.totalorder %s208_s16, %s284_s17  ;;  %p290_p4 = scmp.lt.s32.totalorder %s284_s17, %s284_s17 }
  0x2b   :  { %228 = vmatmul.mubr.msk.f32.vlgmr.msra.gmra.mrb[0].mxu0 %vm47_vm1, %v44_v3  ;;  %233 = vmatmul.mubr.msk.f32.vlgmr.msra.gmra.mrb[0].mxu1 %vm47_vm1, %v44_v3  ;;  %p291_p5 = por %p290_p4, %p289_p3 }
  0x2d   :  { %p292_p6 = pnand %p291_p5, %p285_p2 }
  0xfe   :  { %v120_v5 = vpop.f32.mrb[0].mxu0  ;;  %v196_v6 = vpop.f32.mrb[0].mxu1 }
  0xff   :  { %v121_v7 = vadd.f32 %v120_v5, %v46_v4  ;;  %v197_v8 = vadd.f32 %v196_v6, %v46_v4  ;;  %v229_v9 = vpop.f32.mrb[1].mxu0  ;;  %v234_v10 = vpop.f32.mrb[1].mxu1 }
 0x101   :  { %125 = vst.msk [vmem:[#allocation8] sm:$0x1] %vm124_vm2, %v121_v7  ;;  %200 = vst.msk [vmem:[#allocation8 + $0x1] sm:$0x1] %vm124_vm2, %v197_v8 }
 0x102   :  { %295 = shalt.err (!%p292_p6)
}
 0x103   :  { %s296_s18 = scalar_lea.hbm %s388_s4, 32 }
 0x104   :  { %p297_p7 = scmp.ne.s32.totalorder %s388_s4, %s296_s18  ;;  %p300_p8 = scmp.lt.u32.totalorder %s296_s18, %s388_s4 }
 0x106   :  { %p302_p9 = pnand %p300_p8, %p297_p7 }
 0x108   :  { %305 = shalt.err (!%p302_p9)
}
 0x109   :  { %210 = dma.vmem_to_hbm [thread:$0]  %s208_s16, 32, %s388_s4, [#allocation5]  }
 0x10a   :  { %310 = dma.done.wait [#allocation5], 32  }
 0x10b   :  { %311 = vsyncadd [#allocation5], 4294967264 }
 0x10c   :  { %214 = vsyncpa [#allocation4], 1 }
 0x10d   :  { %215 = vsyncpa [#allocation7], 1 }
 0x10e   :  { %216 = vsyncpa [#allocation5], 1 }

</bundles_post_ra>
